<compile_context>
chip_gen: v7x
topology: tpu7x:2x2x1
jax: 0.10.0
libtpu: 0.0.40
codegen_flags: <defaults>
</compile_context>

<pallas_src>
import jax
import jax.numpy as jnp
from jax.experimental import pallas as pl
from jax.experimental.pallas import tpu as pltpu

HIDDEN = 32
NUM_CLASSES = 3
BN_EPS = 1e-5
DEFAULT_TILE_B = 4096      # rows per grid step (multiple of 8, f32 sublane)


def _round_up(n, m):
    return ((n + m - 1) // m) * m


def kp1_kernel(x_ref, w1_ref, b1_ref, w2_ref, b2_ref, out_ref):
    # First linear (BN already folded into w1/b1): (TILE_B, F) @ (F, H).
    h = jnp.dot(x_ref[...], w1_ref[...], preferred_element_type=jnp.float32)
    # Bias + ReLU (Dropout1d is identity at inference).
    h = jnp.maximum(h + b1_ref[...], 0.0)
    # Output linear straight into the narrow (TILE_B, 3) block.
    out_ref[...] = (
        jnp.dot(h, w2_ref[...], preferred_element_type=jnp.float32) + b2_ref[...]
    )


def _choose_tile_b(B, tile_b):
    """Tile the batch axis: big tiles, but >= 2 grid steps when B allows it."""
    tile_b = max(8, min(tile_b, _round_up(B, 8)))
    # If B would give exactly one full tile plus a sliver, split into ~2 so the
    # "parallel" batch axis shards across both TensorCores on v7x.
    if tile_b < B < 2 * tile_b:
        tile_b = max(8, _round_up(pl.cdiv(B, 2), 8))
    return tile_b


def kp1_forward(x, params, tile_b=DEFAULT_TILE_B):
    """Fused KP1 forward. x: (B, F) f32. Returns (B, NUM_CLASSES) f32."""
    w1, b1, gamma, beta, mean, var, w2, b2 = params
    B, F = x.shape

    # ---- host-side parameter folding (BN -> affine on W1/b1) -------------
    scale = gamma * jax.lax.rsqrt(var + BN_EPS)          # (1, H)
    w1f = w1 * scale                                     # (F, H)
    b1f = (b1 - mean) * scale + beta                     # (1, H)

    # ---- batch tiling ------------------------------------------------------
    tile_b = _choose_tile_b(B, tile_b)
    grid = (pl.cdiv(B, tile_b),)   # last block masked by Pallas, no host pad

    # VMEM budget: x / out double-buffered + hidden temp, all lane-padded to
    # 128 cols (512 B/row each), plus slack for weights & misc.
    vmem_bytes = 5 * tile_b * 512 + (1 << 20)
    vmem_bytes = min(max(vmem_bytes, 16 << 20), 48 << 20)

    out = pl.pallas_call(
        kp1_kernel,
        out_shape=jax.ShapeDtypeStruct((B, NUM_CLASSES), jnp.float32),
        grid=grid,
        in_specs=[
            pl.BlockSpec((tile_b, F), lambda i: (i, 0)),              # x tile
            pl.BlockSpec((F, HIDDEN), lambda i: (0, 0)),              # W1'
            pl.BlockSpec((1, HIDDEN), lambda i: (0, 0)),              # b1'
            pl.BlockSpec((HIDDEN, NUM_CLASSES), lambda i: (0, 0)),    # W2
            pl.BlockSpec((1, NUM_CLASSES), lambda i: (0, 0)),         # b2
        ],
        out_specs=pl.BlockSpec((tile_b, NUM_CLASSES), lambda i: (i, 0)),
        compiler_params=pltpu.CompilerParams(
            dimension_semantics=("parallel",),
            vmem_limit_bytes=vmem_bytes,
        ),
    )(x, w1f, b1f, w2, b2)

    return out


def init_params(num_features):
    key = jax.random.PRNGKey(0)
    k1, k2, k3, k4, k5, k6 = jax.random.split(key, 6)

    # fc_1: LazyLinear(32) -> W1 (F, H), b1 (1, H)
    bound1 = 1.0 / jnp.sqrt(num_features)
    w1 = jax.random.uniform(k1, (num_features, HIDDEN), jnp.float32, -bound1, bound1)
    b1 = jax.random.uniform(k2, (1, HIDDEN), jnp.float32, -bound1, bound1)

    # b_1: LazyBatchNorm1d(32) -- deterministic non-trivial running stats
    gamma = 1.0 + 0.1 * jax.random.normal(k3, (1, HIDDEN), jnp.float32)
    beta = 0.1 * jax.random.normal(k4, (1, HIDDEN), jnp.float32)
    mean = 0.05 * jnp.arange(HIDDEN, dtype=jnp.float32).reshape(1, HIDDEN)
    var = 1.0 + 0.01 * jnp.arange(HIDDEN, dtype=jnp.float32).reshape(1, HIDDEN)

    # out: LazyLinear(3) -> W2 (H, C), b2 (1, C)
    bound2 = 1.0 / jnp.sqrt(HIDDEN)
    w2 = jax.random.uniform(k5, (HIDDEN, NUM_CLASSES), jnp.float32, -bound2, bound2)
    b2 = jax.random.uniform(k6, (1, NUM_CLASSES), jnp.float32, -bound2, bound2)

    return (w1, b1, gamma, beta, mean, var, w2, b2)


def reference_forward(x, params):
    w1, b1, gamma, beta, mean, var, w2, b2 = params
    h = x @ w1 + b1
    h = (h - mean) * jax.lax.rsqrt(var + BN_EPS) * gamma + beta
    h = jnp.maximum(h, 0.0)
    return h @ w2 + b2


if __name__ == "__main__":
    num_features = 16
    params = init_params(num_features)

    # Small canonical shape (single grid step).
    batch = 8
    x = jax.random.normal(jax.random.PRNGKey(0), (batch, num_features), jnp.float32)
    out = jax.block_until_ready(kp1_forward(x, params))
    ref = reference_forward(x, params)
    assert out.shape == (batch, NUM_CLASSES)
    assert jnp.allclose(out, ref, atol=1e-4, rtol=1e-5), "mismatch vs reference"

    # Secondary check: non-multiple-of-tile batch exercises the masked
    # partial last block + multi-step grid.
    batch2 = 200
    x2 = jax.random.normal(jax.random.PRNGKey(1), (batch2, num_features), jnp.float32)
    out2 = jax.block_until_ready(kp1_forward(x2, params, tile_b=64))
    ref2 = reference_forward(x2, params)
    assert out2.shape == (batch2, NUM_CLASSES)
    assert jnp.allclose(out2, ref2, atol=1e-4, rtol=1e-5), "mismatch vs reference (tiled)"

    print("KERNEL_OK")
</pallas_src>

<mosaic_0001>
module attributes {stable_mosaic.version = 11 : i64} {
  func.func @kp1_kernel(%arg0: i32, %arg1: memref<8x16xf32, #tpu.memory_space<vmem>>, %arg2: memref<16x32xf32, #tpu.memory_space<vmem>>, %arg3: memref<1x32xf32, #tpu.memory_space<vmem>>, %arg4: memref<32x3xf32, #tpu.memory_space<vmem>>, %arg5: memref<1x3xf32, #tpu.memory_space<vmem>>, %arg6: memref<8x3xf32, #tpu.memory_space<vmem>>) attributes {dimension_semantics = [#tpu.dimension_semantics<parallel>], iteration_bounds = array<i64: 1>, scalar_prefetch = 0 : i64, scratch_operands = 0 : i64, tpu.core_type = #tpu.core_type<tc>, window_params = [{transform_indices = @transform_0, window_bounds = array<i64: 8, 16>}, {pipeline_mode = #tpu.pipeline_mode<synchronous>, transform_indices = @transform_1, window_bounds = array<i64: 16, 32>}, {pipeline_mode = #tpu.pipeline_mode<synchronous>, transform_indices = @transform_2, window_bounds = array<i64: 1, 32>}, {pipeline_mode = #tpu.pipeline_mode<synchronous>, transform_indices = @transform_3, window_bounds = array<i64: 32, 3>}, {pipeline_mode = #tpu.pipeline_mode<synchronous>, transform_indices = @transform_4, window_bounds = array<i64: 1, 3>}, {transform_indices = @transform_5, window_bounds = array<i64: 8, 3>}]} {
    %c0 = arith.constant 0 : index
    %c0_0 = arith.constant 0 : index
    %0 = vector.load %arg1[%c0, %c0_0] : memref<8x16xf32, #tpu.memory_space<vmem>>, vector<8x16xf32>
    %c0_1 = arith.constant 0 : index
    %c0_2 = arith.constant 0 : index
    %1 = vector.load %arg2[%c0_1, %c0_2] : memref<16x32xf32, #tpu.memory_space<vmem>>, vector<16x32xf32>
    %cst = arith.constant dense<0.000000e+00> : vector<8x32xf32>
    %2 = tpu.matmul %0, %1, %cst {dimension_numbers = #tpu.dot_dimension_numbers<[1], [0], [0], [1], [0, 0, 1, 1], [], []>} : vector<8x16xf32>, vector<16x32xf32>, vector<8x32xf32> -> vector<8x32xf32>
    %c0_3 = arith.constant 0 : index
    %c0_4 = arith.constant 0 : index
    %3 = vector.load %arg3[%c0_3, %c0_4] : memref<1x32xf32, #tpu.memory_space<vmem>>, vector<1x32xf32>
    %4 = vector.broadcast %3 : vector<1x32xf32> to vector<8x32xf32>
    %5 = arith.addf %2, %4 : vector<8x32xf32>
    %cst_5 = arith.constant 0.000000e+00 : f32
    %6 = vector.broadcast %cst_5 : f32 to vector<8x32xf32>
    %7 = arith.maximumf %5, %6 : vector<8x32xf32>
    %c0_6 = arith.constant 0 : index
    %c0_7 = arith.constant 0 : index
    %8 = vector.load %arg4[%c0_6, %c0_7] : memref<32x3xf32, #tpu.memory_space<vmem>>, vector<32x3xf32>
    %cst_8 = arith.constant dense<0.000000e+00> : vector<8x3xf32>
    %9 = tpu.matmul %7, %8, %cst_8 {dimension_numbers = #tpu.dot_dimension_numbers<[1], [0], [0], [1], [0, 0, 1, 1], [], []>} : vector<8x32xf32>, vector<32x3xf32>, vector<8x3xf32> -> vector<8x3xf32>
    %c0_9 = arith.constant 0 : index
    %c0_10 = arith.constant 0 : index
    %10 = vector.load %arg5[%c0_9, %c0_10] : memref<1x3xf32, #tpu.memory_space<vmem>>, vector<1x3xf32>
    %11 = vector.broadcast %10 : vector<1x3xf32> to vector<8x3xf32>
    %12 = arith.addf %9, %11 : vector<8x3xf32>
    %c0_11 = arith.constant 0 : index
    %c0_12 = arith.constant 0 : index
    %13 = vector.load %arg6[%c0_11, %c0_12] : memref<8x3xf32, #tpu.memory_space<vmem>>, vector<8x3xf32>
    tpu.vector_store %arg6[%c0_11, %c0_12], %12 {strides = array<i32>} : memref<8x3xf32, #tpu.memory_space<vmem>>, vector<8x3xf32>,
    return
  }
  func.func @transform_0(%arg0: i32) -> (i32, i32) {
    %c0_i32 = arith.constant 0 : i32
    %c0_i32_0 = arith.constant 0 : i32
    return %arg0, %c0_i32 : i32, i32
  }
  func.func @transform_1(%arg0: i32) -> (i32, i32) {
    %c0_i32 = arith.constant 0 : i32
    %c0_i32_0 = arith.constant 0 : i32
    %c0_i32_1 = arith.constant 0 : i32
    return %c0_i32, %c0_i32_0 : i32, i32
  }
  func.func @transform_2(%arg0: i32) -> (i32, i32) {
    %c0_i32 = arith.constant 0 : i32
    %c0_i32_0 = arith.constant 0 : i32
    %c0_i32_1 = arith.constant 0 : i32
    return %c0_i32, %c0_i32_0 : i32, i32
  }
  func.func @transform_3(%arg0: i32) -> (i32, i32) {
    %c0_i32 = arith.constant 0 : i32
    %c0_i32_0 = arith.constant 0 : i32
    %c0_i32_1 = arith.constant 0 : i32
    return %c0_i32, %c0_i32_0 : i32, i32
  }
  func.func @transform_4(%arg0: i32) -> (i32, i32) {
    %c0_i32 = arith.constant 0 : i32
    %c0_i32_0 = arith.constant 0 : i32
    %c0_i32_1 = arith.constant 0 : i32
    return %c0_i32, %c0_i32_0 : i32, i32
  }
  func.func @transform_5(%arg0: i32) -> (i32, i32) {
    %c0_i32 = arith.constant 0 : i32
    %c0_i32_0 = arith.constant 0 : i32
    return %arg0, %c0_i32 : i32, i32
  }
}

</mosaic_0001>

<bundles_post_ra>
// kernel: tpu_custom_call.1
= control target key start
LH: loop header
LB: loop body
LE: loop exit
PB: predicated region body
PF: predicated region fallthrough
CT: control target
= control target key end

     0   :  { %v238_v0 = vmov 0.0|0.0   ;;  %vm239_vm0 = vmmov 0   ;;  %v240_v3 = vmov 0.0   ;;  %vm30_vm1 = vcmask 130048   ;;  %s301_s1 = inlined_call_operand.vmem [shape: f32[16,32], index: 1, kind: input, shape index: {}]   ;;  %s302_s3 = inlined_call_operand.vmem [shape: f32[32,3], index: 3, kind: input, shape index: {}]   ;;  %s303_s0 = inlined_call_operand.vmem [shape: f32[8,16], index: 0, kind: input, shape index: {}]   ;;  %s304_s2 = inlined_call_operand.vmem [shape: f32[1,32], index: 2, kind: input, shape index: {}]   ;;  %s305_s4 = inlined_call_operand.vmem [shape: f32[1,3], index: 4, kind: input, shape index: {}]   ;;  %s306_s5 = inlined_call_operand.vmem [shape: f32[8,3], index: 5, kind: output, shape index: {}]  }
   0x1   :  { %226 = vmatprep.subr.bf16.mxu0 %v238_v0  ;;  %v21_v1 = vld [vmem:[%s301_s1] sm:$0xff]  ;;  %v22_v2 = vld [vmem:[%s301_s1 + $0x8] sm:$0xff]  ;;  %212 = vmatprep.mubr.msk.f32.mxu0 %vm239_vm0, %v240_v3  ;;  %v107_v9 = vld [vmem:[%s302_s3 + $0x10] sm:$0xff]  ;;  %vm116_vm2 = vcmask 261120   ;;  %vm190_vm3 = vcmask 23552  }
   0x2   :  { %v227_v4 = vpack.c.bf16 %v22_v2, %v21_v1  ;;  %229 = vmatprep.subr.bf16.mxu1 %v238_v0  ;;  %v105_v5 = vld [vmem:[%s302_s3] sm:$0xff]  ;;  %v106_v6 = vld [vmem:[%s302_s3 + $0x8] sm:$0xff]  ;;  %223 = vmatprep.mubr.msk.f32.mxu1 %vm239_vm0, %v240_v3  ;;  %v108_v10 = vld [vmem:[%s302_s3 + $0x18] sm:$0xff] }
   0x3   :  { %v230_v7 = vpack.c.bf16 %v106_v6, %v105_v5  ;;  %v20_v8 = vld [vmem:[%s303_s0] sm:$0xff]  ;;  %v233_v11 = vpack.c.bf16 %v108_v10, %v107_v9 }
   0x4   :  { %228 = vmatpush3.bf16.msra.mxu0 %v227_v4  ;;  %v196_v12 = vld [vmem:[%s304_s2] ss:$0 sm:$0xff] }
   0x5   :  { %231 = vmatpush3.bf16.msra.mxu1 %v230_v7  ;;  %v198_v17 = vld [vmem:[%s305_s4] ss:$0 sm:$0xff] }
   0x6   :  { %232 = vmatprep.subr.bf16.mxu1 %v238_v0 }
   0x7   :  { %213 = vmatmul.mubr.msk.f32.vlgmr.msra.gmra.mrb[0].mxu0 %vm30_vm1, %v20_v8 }
   0x9   :  { %234 = vmatpush3.bf16.msra.mxu1 %v233_v11 }
  0xda   :  { %v100_v13 = vpop.f32.mrb[0].mxu0 }
  0xdb   :  { %v101_v14 = vadd.f32 %v196_v12, %v100_v13  ;;  %v214_v15 = vpop.f32.mrb[1].mxu0 }
  0xdd   :  { %v104_v16 = vmax.f32 %v101_v14, 0.0 }
  0xdf   :  { %224 = vmatmul.mubr.msk.f32.vlgmr.msra.gmra.mrb[0].mxu1 %vm116_vm2, %v104_v16 }
 0x1b2   :  { %v186_v18 = vpop.f32.mrb[0].mxu1 }
 0x1b3   :  { %v187_v19 = vadd.f32 %v198_v17, %v186_v18  ;;  %v225_v20 = vpop.f32.mrb[1].mxu1 }
 0x1b5   :  { %191 = vst.msk [vmem:[%s306_s5] sm:$0xff] %vm190_vm3, %v187_v19 }

</bundles_post_ra>
